<compile_context>
chip_gen: v7x
topology: tpu7x:2x2x1
jax: 0.10.0
libtpu: 0.0.40
codegen_flags: <defaults>
</compile_context>

<pallas_src>
import functools

import numpy as np
import jax
import jax.numpy as jnp
from jax.experimental import pallas as pl
from jax.experimental.pallas import tpu as pltpu


def _round_up(x, m):
    return (x + m - 1) // m * m


# ----------------------------------------------------------------------------
# Pallas kernel 1: batched stage 1x1 convs (bias-free), one grid step per stage.
# ----------------------------------------------------------------------------
def _stage_conv_kernel(x_ref, w_ref, o_ref):
    # x_ref: (1, Mp, C)   w_ref: (1, C, C)   o_ref: (1, Mp, C)
    o_ref[0] = jnp.dot(x_ref[0], w_ref[0],
                       preferred_element_type=jnp.float32).astype(o_ref.dtype)


def stage_convs_pallas(pooled, weights, compute_dtype=jnp.bfloat16):
    """Batched bias-free 1x1 convs: pooled[s] (Ms, C) @ weights[s] (C, C).

    All stages run from a single pallas_call with a stage grid axis; the ragged
    row counts (N*size*size, tiny) are padded to a common sublane-aligned height.
    """
    num = len(pooled)
    C = pooled[0].shape[1]
    ms = [int(p.shape[0]) for p in pooled]
    mp = _round_up(max(ms), 8)
    xs = jnp.stack([jnp.pad(p, ((0, mp - m), (0, 0))) for p, m in zip(pooled, ms)])
    ws = jnp.stack(list(weights))
    out = pl.pallas_call(
        _stage_conv_kernel,
        out_shape=jax.ShapeDtypeStruct((num, mp, C), jnp.float32),
        grid=(num,),
        in_specs=[
            pl.BlockSpec((1, mp, C), lambda s: (s, 0, 0)),
            pl.BlockSpec((1, C, C), lambda s: (s, 0, 0)),
        ],
        out_specs=pl.BlockSpec((1, mp, C), lambda s: (s, 0, 0)),
        compiler_params=pltpu.CompilerParams(dimension_semantics=("parallel",)),
    )(xs.astype(compute_dtype), ws.astype(compute_dtype))
    return [out[s, :m, :] for s, m in enumerate(ms)]


# ----------------------------------------------------------------------------
# Pallas kernel 2: fused bottleneck  y = relu(sum_s x_s @ W_s + b)
# (= 1x1 conv on the concatenated priors, without materializing the concat)
# ----------------------------------------------------------------------------
def _fused_bottleneck_kernel(*refs, num_terms):
    x_refs = refs[:num_terms]
    w_refs = refs[num_terms:2 * num_terms]
    b_ref = refs[2 * num_terms]
    o_ref = refs[2 * num_terms + 1]
    acc = jnp.dot(x_refs[0][...], w_refs[0][...],
                  preferred_element_type=jnp.float32)
    for x_r, w_r in zip(x_refs[1:], w_refs[1:]):
        acc += jnp.dot(x_r[...], w_r[...], preferred_element_type=jnp.float32)
    acc += b_ref[...]                                   # (1, tn) broadcast over rows
    o_ref[...] = jnp.maximum(acc, 0.0).astype(o_ref.dtype)


def _pick_bottleneck_tiles(M, C, N, num_terms, act_bytes):
    # Lane-dense output tile: multiple of 128 when possible, else full width
    # (a full-width block is always layout-legal).
    tn = min(N, 256) if N % 128 == 0 else N
    budget = 16 * 1024 * 1024           # single-copy block budget (~2x w/ double-buffer)
    tm = 512                            # large row tile -> better HBM roofline
    while True:
        blk = (num_terms * tm * C * act_bytes        # activation row tiles
               + num_terms * C * tn * act_bytes      # weight K-slices
               + tm * tn * 4 + tn * 4)               # f32 out tile + bias
        if blk <= budget or tm <= 8:
            break
        tm //= 2
    tm = max(8, min(tm, _round_up(M, 8)))
    return tm, tn, blk


def fused_bottleneck_pallas(priors, w_slices, bias, *,
                            compute_dtype=jnp.bfloat16, out_dtype=jnp.float32):
    """relu(sum_s priors[s] @ w_slices[s] + bias) with no HBM concat / pad / slice.

    priors[s]: (M, C); w_slices[s]: (C, N); bias: (N,).
    Grid is (N-tiles, M-tiles): the small weight K-slices stay VMEM-resident across
    the inner M loop while the large activations stream through once per N tile.
    """
    num = len(priors)
    M, C = priors[0].shape
    N = w_slices[0].shape[1]
    act_b = jnp.dtype(compute_dtype).itemsize
    tm, tn, blk = _pick_bottleneck_tiles(M, C, N, num, act_b)
    grid = (pl.cdiv(N, tn), pl.cdiv(M, tm))

    in_specs = (
        [pl.BlockSpec((tm, C), lambda j, i: (i, 0)) for _ in range(num)]     # activations
        + [pl.BlockSpec((C, tn), lambda j, i: (0, j)) for _ in range(num)]   # weight slices
        + [pl.BlockSpec((1, tn), lambda j, i: (0, j))]                       # bias row
    )
    out_spec = pl.BlockSpec((tm, tn), lambda j, i: (i, j))

    cost = pl.CostEstimate(
        flops=2 * M * (num * C) * N,
        transcendentals=0,
        bytes_accessed=(num * M * C * act_b + num * C * N * act_b
                        + N * 4 + M * N * jnp.dtype(out_dtype).itemsize),
    )

    args = ([p.astype(compute_dtype) for p in priors]
            + [w.astype(compute_dtype) for w in w_slices]
            + [bias.astype(jnp.float32).reshape(1, N)])

    return pl.pallas_call(
        functools.partial(_fused_bottleneck_kernel, num_terms=num),
        out_shape=jax.ShapeDtypeStruct((M, N), out_dtype),
        grid=grid,
        in_specs=in_specs,
        out_specs=out_spec,
        compiler_params=pltpu.CompilerParams(
            dimension_semantics=("parallel", "parallel"),
            vmem_limit_bytes=int(min(max(3 * blk + (2 << 20), 16 << 20), 32 << 20)),
        ),
        cost_estimate=cost,
    )(*args)


# ----------------------------------------------------------------------------
# Exact spatial linear maps (glue): adaptive avg-pool and bilinear upsample
# (align_corners=False, matching F.upsample/F.interpolate defaults).
# TODO(synk): these tiny spatial resamplings stay as plain-JAX einsums; they are
# not worth a Pallas kernel (few KB of data) but could be folded in later.
# ----------------------------------------------------------------------------
def _adaptive_pool_matrix(in_size, out_size):
    P = np.zeros((out_size, in_size), dtype=np.float32)
    for i in range(out_size):
        start = (i * in_size) // out_size
        end = -(-((i + 1) * in_size) // out_size)  # ceil
        P[i, start:end] = 1.0 / (end - start)
    return P


def _bilinear_matrix(in_size, out_size):
    R = np.zeros((out_size, in_size), dtype=np.float32)
    scale = in_size / out_size
    for i in range(out_size):
        src = max((i + 0.5) * scale - 0.5, 0.0)
        i0 = min(int(np.floor(src)), in_size - 1)
        i1 = min(i0 + 1, in_size - 1)
        l1 = src - i0
        R[i, i0] += 1.0 - l1
        R[i, i1] += l1
    return R


# ----------------------------------------------------------------------------
# PSPModule
# ----------------------------------------------------------------------------
class PSPModulePallas:
    def __init__(self, features, out_features=1024, sizes=(1, 2, 3, 6),
                 key=None, compute_dtype=jnp.bfloat16):
        self.features = features
        self.out_features = out_features
        self.sizes = tuple(sizes)
        self.compute_dtype = compute_dtype
        key = jax.random.PRNGKey(0) if key is None else key
        keys = jax.random.split(key, len(self.sizes) + 2)
        scale = 1.0 / np.sqrt(features)
        # stage convs: Conv2d(features, features, 1, bias=False); stored as (C_in, C_out)
        self.stage_w = [
            (scale * jax.random.normal(keys[i], (features, features))).astype(jnp.float32)
            for i in range(len(self.sizes))
        ]
        cin = features * (len(self.sizes) + 1)
        bscale = 1.0 / np.sqrt(cin)
        w_full = (bscale * jax.random.normal(keys[-2], (cin, out_features))).astype(jnp.float32)
        # Per-prior K-slices of the bottleneck weight; the activation-side concat
        # is never materialized (the kernel accumulates the partial matmuls).
        self.bottleneck_w_slices = [
            w_full[s * features:(s + 1) * features] for s in range(len(self.sizes) + 1)
        ]
        self.bottleneck_b = (bscale * jax.random.normal(keys[-1], (out_features,))).astype(jnp.float32)

    def __call__(self, feats_nchw, compute_dtype=None):
        cd = self.compute_dtype if compute_dtype is None else compute_dtype
        B, C, H, W = feats_nchw.shape
        x = jnp.transpose(feats_nchw, (0, 2, 3, 1))                 # NCHW -> NHWC
        # 1) adaptive average pools (exact linear maps, tiny)
        pooled = []
        for size in self.sizes:
            Ph = jnp.asarray(_adaptive_pool_matrix(H, size))
            Pw = jnp.asarray(_adaptive_pool_matrix(W, size))
            p = jnp.einsum('ah,nhwc,bw->nabc', Ph, x, Pw)
            pooled.append(p.reshape(-1, C))
        # 2) the four stage 1x1 convs in ONE batched Pallas call
        convs = stage_convs_pallas(pooled, self.stage_w, compute_dtype=cd)
        # 3) bilinear upsample (align_corners=False) back to (H, W)
        priors = []
        for size, conv in zip(self.sizes, convs):
            conv = conv.reshape(B, size, size, C)
            Rh = jnp.asarray(_bilinear_matrix(size, H))
            Rw = jnp.asarray(_bilinear_matrix(size, W))
            up = jnp.einsum('ia,nabc,jb->nijc', Rh, conv, Rw)
            priors.append(up.reshape(-1, C))
        priors.append(x.reshape(-1, C))
        # 4) fused bottleneck 1x1 conv + bias + ReLU (no concat / pad / slice)
        out2d = fused_bottleneck_pallas(priors, self.bottleneck_w_slices,
                                        self.bottleneck_b, compute_dtype=cd)
        out = out2d.reshape(B, H, W, self.out_features)
        return jnp.transpose(out, (0, 3, 1, 2))                     # NHWC -> NCHW

    def reference(self, feats_nchw):
        """Plain-jnp f32 reference (same math, explicit concat, no Pallas)."""
        B, C, H, W = feats_nchw.shape
        x = jnp.transpose(feats_nchw, (0, 2, 3, 1))
        priors = []
        for size, w_s in zip(self.sizes, self.stage_w):
            Ph = jnp.asarray(_adaptive_pool_matrix(H, size))
            Pw = jnp.asarray(_adaptive_pool_matrix(W, size))
            pooled = jnp.einsum('ah,nhwc,bw->nabc', Ph, x, Pw)
            conv = (pooled.reshape(-1, C) @ w_s).reshape(B, size, size, C)
            Rh = jnp.asarray(_bilinear_matrix(size, H))
            Rw = jnp.asarray(_bilinear_matrix(size, W))
            priors.append(jnp.einsum('ia,nabc,jb->nijc', Rh, conv, Rw))
        priors.append(x)
        cat = jnp.concatenate(priors, axis=-1).reshape(-1, C * (len(self.sizes) + 1))
        w_full = jnp.concatenate(self.bottleneck_w_slices, axis=0)
        y = jnp.maximum(cat @ w_full + self.bottleneck_b, 0.0)
        return jnp.transpose(y.reshape(B, H, W, self.out_features), (0, 3, 1, 2))


if __name__ == "__main__":
    key = jax.random.PRNGKey(0)
    x = jax.random.normal(key, (2, 4, 16, 16), dtype=jnp.float32)   # NCHW, like PyTorch

    mod = PSPModulePallas(features=4, out_features=32, sizes=(1, 2, 3, 6),
                          key=jax.random.PRNGKey(0))
    ref = mod.reference(x)

    # f32-operand pass: tight structural / indexing check of the kernels.
    out_f32 = jax.block_until_ready(mod(x, compute_dtype=jnp.float32))
    assert out_f32.shape == (2, 32, 16, 16), out_f32.shape
    np.testing.assert_allclose(np.asarray(out_f32), np.asarray(ref), rtol=1e-3, atol=1e-3)

    # default bf16-operand pass (f32 accumulation): loosened tolerance.
    out = jax.block_until_ready(mod(x))
    assert out.shape == (2, 32, 16, 16), out.shape
    np.testing.assert_allclose(np.asarray(out), np.asarray(ref), rtol=5e-2, atol=5e-2)

    print("KERNEL_OK")
</pallas_src>

<mosaic_0001>
module attributes {stable_mosaic.version = 11 : i64} {
  func.func @_stage_conv_kernel(%arg0: i32, %arg1: memref<1x72x4xf32, #tpu.memory_space<vmem>>, %arg2: memref<1x4x4xf32, #tpu.memory_space<vmem>>, %arg3: memref<1x72x4xf32, #tpu.memory_space<vmem>>) attributes {dimension_semantics = [#tpu.dimension_semantics<parallel>], iteration_bounds = array<i64: 4>, scalar_prefetch = 0 : i64, scratch_operands = 0 : i64, tpu.core_type = #tpu.core_type<tc>, window_params = [{transform_indices = @transform_0, window_bounds = array<i64: 1, 72, 4>}, {transform_indices = @transform_1, window_bounds = array<i64: 1, 4, 4>}, {transform_indices = @transform_2, window_bounds = array<i64: 1, 72, 4>}]} {
    %c0 = arith.constant 0 : index
    %c0_0 = arith.constant 0 : index
    %c0_1 = arith.constant 0 : index
    %0 = vector.load %arg1[%c0, %c0_0, %c0_1] : memref<1x72x4xf32, #tpu.memory_space<vmem>>, vector<1x72x4xf32>
    %1 = vector.shape_cast %0 : vector<1x72x4xf32> to vector<72x4xf32>
    %c0_2 = arith.constant 0 : index
    %c0_3 = arith.constant 0 : index
    %c0_4 = arith.constant 0 : index
    %2 = vector.load %arg2[%c0_2, %c0_3, %c0_4] : memref<1x4x4xf32, #tpu.memory_space<vmem>>, vector<1x4x4xf32>
    %3 = vector.shape_cast %2 : vector<1x4x4xf32> to vector<4x4xf32>
    %cst = arith.constant dense<0.000000e+00> : vector<72x4xf32>
    %4 = tpu.matmul %1, %3, %cst {dimension_numbers = #tpu.dot_dimension_numbers<[1], [0], [0], [1], [0, 0, 1, 1], [], []>} : vector<72x4xf32>, vector<4x4xf32>, vector<72x4xf32> -> vector<72x4xf32>
    %c0_5 = arith.constant 0 : index
    %c0_6 = arith.constant 0 : index
    %c0_7 = arith.constant 0 : index
    %5 = vector.load %arg3[%c0_5, %c0_6, %c0_7] : memref<1x72x4xf32, #tpu.memory_space<vmem>>, vector<1x72x4xf32>
    %6 = vector.shape_cast %5 : vector<1x72x4xf32> to vector<72x4xf32>
    %7 = vector.shape_cast %4 : vector<72x4xf32> to vector<1x72x4xf32>
    tpu.vector_store %arg3[%c0_5, %c0_6, %c0_7], %7 {strides = array<i32>} : memref<1x72x4xf32, #tpu.memory_space<vmem>>, vector<1x72x4xf32>,
    return
  }
  func.func @transform_0(%arg0: i32) -> (i32, i32, i32) {
    %c0_i32 = arith.constant 0 : i32
    %c0_i32_0 = arith.constant 0 : i32
    %c0_i32_1 = arith.constant 0 : i32
    return %arg0, %c0_i32, %c0_i32_0 : i32, i32, i32
  }
  func.func @transform_1(%arg0: i32) -> (i32, i32, i32) {
    %c0_i32 = arith.constant 0 : i32
    %c0_i32_0 = arith.constant 0 : i32
    %c0_i32_1 = arith.constant 0 : i32
    return %arg0, %c0_i32, %c0_i32_0 : i32, i32, i32
  }
  func.func @transform_2(%arg0: i32) -> (i32, i32, i32) {
    %c0_i32 = arith.constant 0 : i32
    %c0_i32_0 = arith.constant 0 : i32
    %c0_i32_1 = arith.constant 0 : i32
    return %arg0, %c0_i32, %c0_i32_0 : i32, i32, i32
  }
}

</mosaic_0001>

<bundles_post_ra>
// kernel: tpu_custom_call.1
= control target key start
LH: loop header
LB: loop body
LE: loop exit
PB: predicated region body
PF: predicated region fallthrough
CT: control target
= control target key end

     0   :  { %s486_s9 = smov 0   ;;  %s541_s0 = inlined_call_operand.vmem [shape: f32[4,72,4], index: 0, kind: input, shape index: {}]   ;;  %s542_s1 = inlined_call_operand.vmem [shape: f32[4,4,4], index: 1, kind: input, shape index: {}]   ;;  %s543_s2 = inlined_call_operand.vmem [shape: f32[4,72,4], index: 2, kind: output, shape index: {}]  }
   0x1 LB: > { %s389_s10 = sadd.s32 4294967295, %s467_s9   ;;  %p393_p0 = scmp.ge.s32.totalorder %s467_s9, 1  ;;  %s467_s9 = sphi %s486_s9, %s12_s9  }
   0x2   : > { %p121_p1 = scmp.lt.s32.totalorder %s467_s9, 5 }
   0x4   : > { %p122_p2 = pnand %p393_p0, %p121_p1 }
   0x5   : > { %p147_p3 = scmp.lt.s32.totalorder (!%p122_p2), %s389_s10, 3  ;;  %v469_v0 = vmov (!%p122_p2), 0.0   ;;  %vm470_vm0 = vmmov (!%p122_p2), 0   ;;  %vm199_vm1 = vcmask (!%p122_p2), 1043456   ;;  %vm171_vm2 = vcmask (!%p122_p2), 31744  }
   0x6   : > { %125 = sbr.rel (%p122_p2) target bundleno = 247 (0xf7), region = 28  ;;  %419 = vmatprep.subr.mxu0 (!%p122_p2), %v469_v0  ;;  %421 = vmatprep.mubr.msk.f32.mxu0 (!%p122_p2), %vm470_vm0, %v469_v0 }
   0x7   : > { %448 = vmatprep.subr.mxu1 (!%p122_p2), %v469_v0  ;;  %436 = vmatprep.mubr.msk.f32.mxu1 (!%p122_p2), %vm470_vm0, %v469_v0 }
   0xd   : > { %s545_s10 = smov (!%p147_p3, %s389_s10), 3 }
   0xe   : > { %s450_s11 = smul.u32 72, %s545_s10  ;;  %s395_s12 = sshll.u32 %s545_s10, 2 }
   0xf   : > { %s155_s15 = scalar_lea.vmem %s542_s1, %s395_s12 }
  0x10   : > { %s151_s18 = scalar_lea.vmem %s541_s0, %s450_s11  ;;  %v170_v1 = vld [vmem:[%s155_s15] sm:$0xf]  ;;  %s160_s21 = scalar_lea.vmem %s543_s2, %s450_s11 }
  0x11   : > { %420 = vmatpush3.msk.msra.mxu0 %vm199_vm1, %v170_v1  ;;  %v161_v2 = vld [vmem:[%s151_s18] sm:$0xff]  ;;  %449 = vmatpush3.msk.msra.mxu1 %vm199_vm1, %v170_v1  ;;  %v166_v3 = vld [vmem:[%s151_s18 + $0x28] sm:$0xff]  ;;  %v167_v5 = vld [vmem:[%s151_s18 + $0x30] sm:$0xff] }
  0x12   : > { %422 = vmatmul.mubr.msk.f32.vlgmr.msra.gmra.mrb[0].mxu0 %vm171_vm2, %v161_v2  ;;  %437 = vmatmul.mubr.msk.f32.vlgmr.msra.gmra.mrb[0].mxu1 %vm171_vm2, %v166_v3  ;;  %v162_v4 = vld [vmem:[%s151_s18 + $0x8] sm:$0xff]  ;;  %v163_v6 = vld [vmem:[%s151_s18 + $0x10] sm:$0xff]  ;;  %v168_v7 = vld [vmem:[%s151_s18 + $0x38] sm:$0xff] }
  0x13   : > { %424 = vmatprep.mubr.msk.f32.mxu0 %vm470_vm0, %v469_v0  ;;  %439 = vmatprep.mubr.msk.f32.mxu1 %vm470_vm0, %v469_v0  ;;  %v164_v8 = vld [vmem:[%s151_s18 + $0x18] sm:$0xff]  ;;  %v169_v9 = vld [vmem:[%s151_s18 + $0x40] sm:$0xff] }
  0x14   : > { %v165_v10 = vld [vmem:[%s151_s18 + $0x20] sm:$0xff] }
  0x16   : > { %425 = vmatmul.mubr.msk.f32.gmra.mrb[2].mxu0 %vm171_vm2, %v162_v4  ;;  %440 = vmatmul.mubr.msk.f32.gmra.mrb[2].mxu1 %vm171_vm2, %v167_v5 }
  0x17   : > { %427 = vmatprep.mubr.msk.f32.mxu0 %vm470_vm0, %v469_v0  ;;  %442 = vmatprep.mubr.msk.f32.mxu1 %vm470_vm0, %v469_v0 }
  0x1a   : > { %428 = vmatmul.mubr.msk.f32.gmra.mrb[4].mxu0 %vm171_vm2, %v163_v6  ;;  %443 = vmatmul.mubr.msk.f32.gmra.mrb[4].mxu1 %vm171_vm2, %v168_v7 }
  0x1b   : > { %430 = vmatprep.mubr.msk.f32.mxu0 %vm470_vm0, %v469_v0  ;;  %445 = vmatprep.mubr.msk.f32.mxu1 %vm470_vm0, %v469_v0 }
  0x1e   : > { %431 = vmatmul.mubr.msk.f32.gmra.mrb[6].mxu0 %vm171_vm2, %v164_v8  ;;  %446 = vmatmul.mubr.msk.f32.gmra.mrb[6].mxu1 %vm171_vm2, %v169_v9 }
  0x1f   : > { %433 = vmatprep.mubr.msk.f32.mxu0 %vm470_vm0, %v469_v0 }
  0x22   : > { %434 = vmatmul.mubr.msk.f32.gmra.mrb[8].mxu0 %vm171_vm2, %v165_v10 }
  0xe5   : > { %v269_v11 = vpop.f32.mrb[0].mxu0  ;;  %v294_v12 = vpop.f32.mrb[0].mxu1 }
  0xe6   : > { %313 = vst.msk [vmem:[%s160_s21] sm:$0xff] %vm171_vm2, %v269_v11  ;;  %v423_v13 = vpop.f32.mrb[1].mxu0  ;;  %318 = vst.msk [vmem:[%s160_s21 + $0x28] sm:$0xff] %vm171_vm2, %v294_v12  ;;  %v438_v14 = vpop.f32.mrb[1].mxu1 }
  0xe9   : > { %v274_v15 = vpop.f32.mrb[2].mxu0  ;;  %v299_v16 = vpop.f32.mrb[2].mxu1 }
  0xea   : > { %314 = vst.msk [vmem:[%s160_s21 + $0x8] sm:$0xff] %vm171_vm2, %v274_v15  ;;  %v426_v17 = vpop.f32.mrb[3].mxu0  ;;  %319 = vst.msk [vmem:[%s160_s21 + $0x30] sm:$0xff] %vm171_vm2, %v299_v16  ;;  %v441_v18 = vpop.f32.mrb[3].mxu1 }
  0xed   : > { %v279_v19 = vpop.f32.mrb[4].mxu0  ;;  %v304_v20 = vpop.f32.mrb[4].mxu1 }
  0xee   : > { %315 = vst.msk [vmem:[%s160_s21 + $0x10] sm:$0xff] %vm171_vm2, %v279_v19  ;;  %v429_v21 = vpop.f32.mrb[5].mxu0  ;;  %320 = vst.msk [vmem:[%s160_s21 + $0x38] sm:$0xff] %vm171_vm2, %v304_v20  ;;  %v444_v22 = vpop.f32.mrb[5].mxu1 }
  0xf1   : > { %v284_v23 = vpop.f32.mrb[6].mxu0  ;;  %v309_v24 = vpop.f32.mrb[6].mxu1 }
  0xf2   : > { %316 = vst.msk [vmem:[%s160_s21 + $0x18] sm:$0xff] %vm171_vm2, %v284_v23  ;;  %v432_v25 = vpop.f32.mrb[7].mxu0  ;;  %321 = vst.msk [vmem:[%s160_s21 + $0x40] sm:$0xff] %vm171_vm2, %v309_v24  ;;  %v447_v26 = vpop.f32.mrb[7].mxu1 }
  0xf5   : > { %v289_v27 = vpop.f32.mrb[8].mxu0 }
  0xf6   : > { %317 = vst.msk [vmem:[%s160_s21 + $0x20] sm:$0xff] %vm171_vm2, %v289_v27  ;;  %v435_v28 = vpop.f32.mrb[9].mxu0 }
  0xf7 PF: > { %s12_s9 = sadd.s32 1, %s467_s9  }
  0xf8   : > { %p9_p4 = scmp.ge.s32.totalorder %s12_s9, 6  }
  0xfa   :  { %11 = sbr.rel (!%p9_p4) target bundleno = 1 (0x1), region = 61 }

</bundles_post_ra>
